<compile_context>
chip_gen: v7x
topology: tpu7x:2x2x1
jax: 0.10.0
libtpu: 0.0.40
codegen_flags: <defaults>
</compile_context>

<pallas_src>
import math

import jax
import jax.numpy as jnp
from jax.experimental import pallas as pl
from jax.experimental.pallas import tpu as pltpu


def fa_agg_kernel(cnt_ref, ktab_ref, t_col_ref, t_row_ref, g_ref, h_ref,
                  out_ref, acc_ref):
    """Grid point (i, k): gate + mask one (TM, TK) adjacency tile (the k-th
    nonzero column-tile of row-tile i) and accumulate its contribution to the
    (TM, F_out) output row-tile."""
    i = pl.program_id(0)
    k = pl.program_id(1)
    nk = pl.num_programs(1)

    @pl.when(k == 0)
    def _():
        acc_ref[...] = jnp.zeros_like(acc_ref)

    # Skip compute for empty / padded column-tiles (DMA for those steps is also
    # elided because the index_map repeats the previous block index).
    @pl.when(k < cnt_ref[i])
    def _():
        tk = g_ref.shape[1]
        kk = ktab_ref[i * nk + k]                 # SMEM scalar: real column-tile index

        # tanh addition identity: tanh(si+sj) = (ti+tj) / (1 + ti*tj).
        t_i = t_col_ref[...]                      # (TM, 1)  f32
        t_j = t_row_ref[...]                      # (1, TK)  f32
        num = t_i + t_j                           # (TM, TK)
        den = 1.0 + t_i * t_j                     # strictly > 0 since |t| < 1
        gate = num * pl.reciprocal(den, approx=True)

        # Structural mask (G_i8 is 0/1), so multiply == where(G != 0, gate, 0).
        g_new = gate * g_ref[...].astype(gate.dtype)

        # Aggregate against the resident h slab: bf16 MXU operands, f32 accum.
        h_blk = h_ref[pl.ds(pl.multiple_of(kk * tk, tk), tk), :]
        acc_ref[...] += jnp.dot(g_new.astype(h_ref.dtype), h_blk,
                                preferred_element_type=jnp.float32)

    @pl.when(k == nk - 1)
    def _():
        out_ref[...] = acc_ref[...].astype(out_ref.dtype)


def fa_layer(x, G, gate_w, gate_b, weight, bias, *,
             tile_rows=512, tile_k=2048, mxu_dtype=jnp.bfloat16):
    V, f_in = x.shape
    f_out = weight.shape[1]
    tm = min(tile_rows, V)
    tk = min(tile_k, V)
    # TODO(synk): for general V use pl.cdiv grids with padding/masking.
    assert V % tm == 0 and V % tk == 0, "V must be divisible by the tile sizes"
    nm, nk = V // tm, V // tk

    # Hoisted O(V) / O(V*F) precompute (tiny vs the O(V^2) aggregation):
    #   t = tanh(gate(x)) per node (feeds the in-kernel tanh addition identity),
    #   h = x @ W + b transformed features as bf16 MXU operand.
    s = x @ gate_w.T + gate_b                               # (V, 1)
    t = jnp.tanh(s).astype(jnp.float32)                     # (V, 1)
    t_row = t.T                                             # (1, V)
    h = (x @ weight + bias).astype(mxu_dtype)               # (V, F_out)

    # Adjacency as an int8 0/1 structural mask: 4x fewer HBM bytes than f32.
    G_i8 = (G != 0).astype(jnp.int8)

    # Block-sparsity metadata (scalar-prefetched into SMEM, flat 1-D to avoid
    # SMEM 2-D padding blowup): per row-tile the compacted list of nonzero
    # column-tiles and its count.  Trailing empty slots repeat the last valid
    # index so consecutive grid steps keep the same block index (DMA elided).
    tile_nz = (G != 0).reshape(nm, tm, nk, tk).any(axis=(1, 3))     # (nm, nk)
    cnt = tile_nz.sum(axis=1).astype(jnp.int32)                     # (nm,)
    order = jnp.argsort(~tile_nz, axis=1)                           # nonzero tiles first (stable)
    ks = jnp.arange(nk)[None, :]
    clamp = jnp.maximum(cnt - 1, 0)[:, None]
    ktab = jnp.take_along_axis(order, jnp.minimum(ks, clamp), axis=1)
    ktab_flat = ktab.reshape(-1).astype(jnp.int32)                  # (nm*nk,)

    # VMEM budget: double-buffered int8 G / t tiles + resident h (double-buffered
    # by the pipeline) + f32 accumulator + output buffers, with 2x headroom.
    vmem_bytes = (2 * tm * tk                      # G tiles (int8)
                  + 2 * (tm + tk) * 4              # t_col / t_row tiles (f32)
                  + 2 * V * f_out * 2              # resident h (bf16)
                  + 3 * tm * f_out * 4)            # accumulator + output buffers
    vmem_limit = int(min(100 * 1024 * 1024, max(32 * 1024 * 1024, 2 * vmem_bytes)))

    return pl.pallas_call(
        fa_agg_kernel,
        out_shape=jax.ShapeDtypeStruct((V, f_out), jnp.float32),
        grid_spec=pltpu.PrefetchScalarGridSpec(
            num_scalar_prefetch=2,
            grid=(nm, nk),
            in_specs=[
                # per-node tanh(gate) for this row tile
                pl.BlockSpec((tm, 1), lambda i, k, cnt, ktab: (i, 0)),
                # per-node tanh(gate) for the k-th nonzero column tile
                pl.BlockSpec((1, tk),
                             lambda i, k, cnt, ktab: (0, ktab[i * nk + k])),
                # int8 adjacency tile (structural mask), block-sparse indexed
                pl.BlockSpec((tm, tk),
                             lambda i, k, cnt, ktab: (i, ktab[i * nk + k])),
                # transformed features h: fully VMEM-resident (DMA'd once)
                pl.BlockSpec((V, f_out), lambda i, k, cnt, ktab: (0, 0)),
            ],
            out_specs=pl.BlockSpec((tm, f_out), lambda i, k, cnt, ktab: (i, 0)),
            scratch_shapes=[pltpu.VMEM((tm, f_out), jnp.float32)],
        ),
        compiler_params=pltpu.CompilerParams(
            dimension_semantics=("parallel", "arbitrary"),
            vmem_limit_bytes=vmem_limit),
    )(cnt, ktab_flat, t, t_row, G_i8, h)


def fa_layer_ref(x, G, gate_w, gate_b, weight, bias):
    """Pure-JAX f32 reference for correctness checking."""
    s = x @ gate_w.T + gate_b                  # (V, 1)
    gate_mat = jnp.tanh(s + s.T)               # (V, V)
    g_new = jnp.where(G != 0.0, gate_mat, 0.0)
    h = x @ weight + bias
    return g_new @ h


if __name__ == "__main__":
    V, F_IN, F_OUT = 256, 64, 128   # F_OUT=128 keeps the output lane-dense

    key = jax.random.PRNGKey(0)
    k_x, k_g, k_gw, k_gb, k_w, k_b = jax.random.split(key, 6)

    # Inputs.
    x = jax.random.normal(k_x, (V, F_IN), dtype=jnp.float32)
    G = (jax.random.uniform(k_g, (V, V)) < 0.05).astype(jnp.float32)
    # Zero out one full (128, 128) block so the block-sparse skip path
    # (cnt < num_k_tiles, repeated/elided DMA, pl.when compute skip) is exercised.
    G = G.at[:128, 128:].set(0.0)

    # Parameters (deterministic, mirroring the module's __init__ shapes/inits).
    gate_std = 1.414 * math.sqrt(2.0 / (F_IN + 1))           # xavier_normal_, gain=1.414
    gate_w = gate_std * jax.random.normal(k_gw, (1, F_IN), dtype=jnp.float32)
    gate_b = jax.random.uniform(k_gb, (1, 1), dtype=jnp.float32,
                                minval=-1.0 / math.sqrt(F_IN),
                                maxval=1.0 / math.sqrt(F_IN))
    stdv = 1.0 / math.sqrt(F_OUT)
    weight = jax.random.uniform(k_w, (F_IN, F_OUT), dtype=jnp.float32,
                                minval=-stdv, maxval=stdv)
    bias = jax.random.uniform(k_b, (F_OUT,), dtype=jnp.float32,
                              minval=-stdv, maxval=stdv)

    # Small tiles for the tiny demo (grid (2, 2) exercises the parallel row axis,
    # the accumulating contraction axis, and the block-sparse tile skip);
    # defaults (512, 2048) are production-sized with int8 G.
    out = fa_layer(x, G, gate_w, gate_b, weight, bias, tile_rows=128, tile_k=128)
    out = jax.block_until_ready(out)

    ref = fa_layer_ref(x, G, gate_w, gate_b, weight, bias)
    assert out.shape == (V, F_OUT)
    # bf16 MXU operands + approx-reciprocal tanh identity, f32 accumulation:
    # well inside the stated tolerance.
    assert jnp.allclose(out, ref, rtol=5e-2, atol=5e-2), "mismatch vs. JAX reference"

    print("KERNEL_OK")
</pallas_src>

<mosaic_0001>
module attributes {stable_mosaic.version = 11 : i64} {
  func.func @fa_agg_kernel(%arg0: i32, %arg1: i32, %arg2: memref<2xi32, #tpu.memory_space<smem>>, %arg3: memref<4xi32, #tpu.memory_space<smem>>, %arg4: memref<128x1xf32, #tpu.memory_space<vmem>>, %arg5: memref<1x128xf32, #tpu.memory_space<vmem>>, %arg6: memref<128x128xi8, #tpu.memory_space<vmem>>, %arg7: memref<256x128xbf16, #tpu.memory_space<vmem>>, %arg8: memref<128x128xf32, #tpu.memory_space<vmem>>, %arg9: memref<128x128xf32, #tpu.memory_space<vmem>>) attributes {dimension_semantics = [#tpu.dimension_semantics<parallel>, #tpu.dimension_semantics<arbitrary>], iteration_bounds = array<i64: 2, 2>, scalar_prefetch = 2 : i64, scratch_operands = 1 : i64, tpu.core_type = #tpu.core_type<tc>, window_params = [{transform_indices = @transform_0, window_bounds = array<i64: 128, 1>}, {transform_indices = @transform_1, window_bounds = array<i64: 1, 128>}, {transform_indices = @transform_2, window_bounds = array<i64: 128, 128>}, {pipeline_mode = #tpu.pipeline_mode<synchronous>, transform_indices = @transform_3, window_bounds = array<i64: 256, 128>}, {transform_indices = @transform_4, window_bounds = array<i64: 128, 128>}]} {
    %c0_i32 = arith.constant 0 : i32
    %0 = arith.cmpi eq, %arg1, %c0_i32 : i32
    %1 = arith.extui %0 : i1 to i32
    %c0_i32_0 = arith.constant 0 : i32
    %2 = arith.cmpi ne, %1, %c0_i32_0 : i32
    scf.if %2 {
      %cst = arith.constant 0.000000e+00 : f32
      %11 = vector.broadcast %cst : f32 to vector<128x128xf32>
      %c0 = arith.constant 0 : index
      %c0_3 = arith.constant 0 : index
      %12 = vector.load %arg9[%c0, %c0_3] : memref<128x128xf32, #tpu.memory_space<vmem>>, vector<128x128xf32>
      tpu.vector_store %arg9[%c0, %c0_3], %11 {strides = array<i32>} : memref<128x128xf32, #tpu.memory_space<vmem>>, vector<128x128xf32>,
    } else {
    }
    %3 = arith.index_cast %arg0 : i32 to index
    %4 = memref.load %arg2[%3] : memref<2xi32, #tpu.memory_space<smem>>
    %5 = arith.cmpi slt, %arg1, %4 : i32
    %6 = arith.extui %5 : i1 to i32
    %c0_i32_1 = arith.constant 0 : i32
    %7 = arith.cmpi ne, %6, %c0_i32_1 : i32
    scf.if %7 {
      %c2_i32 = arith.constant 2 : i32
      %11 = arith.muli %arg0, %c2_i32 : i32
      %12 = arith.addi %11, %arg1 : i32
      %13 = arith.index_cast %12 : i32 to index
      %14 = memref.load %arg3[%13] : memref<4xi32, #tpu.memory_space<smem>>
      %c0 = arith.constant 0 : index
      %c0_3 = arith.constant 0 : index
      %15 = vector.load %arg4[%c0, %c0_3] : memref<128x1xf32, #tpu.memory_space<vmem>>, vector<128x1xf32>
      %c0_4 = arith.constant 0 : index
      %c0_5 = arith.constant 0 : index
      %16 = vector.load %arg5[%c0_4, %c0_5] : memref<1x128xf32, #tpu.memory_space<vmem>>, vector<1x128xf32>
      %17 = vector.broadcast %15 : vector<128x1xf32> to vector<128x128xf32>
      %18 = vector.broadcast %16 : vector<1x128xf32> to vector<128x128xf32>
      %19 = arith.addf %17, %18 : vector<128x128xf32>
      %20 = vector.broadcast %15 : vector<128x1xf32> to vector<128x128xf32>
      %21 = vector.broadcast %16 : vector<1x128xf32> to vector<128x128xf32>
      %22 = arith.mulf %20, %21 : vector<128x128xf32>
      %cst = arith.constant 1.000000e+00 : f32
      %23 = vector.broadcast %cst : f32 to vector<128x128xf32>
      %24 = arith.addf %23, %22 : vector<128x128xf32>
      %25 = tpu.reciprocal %24 {approx = true} : vector<128x128xf32> -> vector<128x128xf32>
      %26 = arith.mulf %19, %25 : vector<128x128xf32>
      %c0_6 = arith.constant 0 : index
      %c0_7 = arith.constant 0 : index
      %27 = vector.load %arg6[%c0_6, %c0_7] : memref<128x128xi8, #tpu.memory_space<vmem>>, vector<128x128xi8>
      %28 = arith.sitofp %27 : vector<128x128xi8> to vector<128x128xf32>
      %29 = arith.mulf %26, %28 : vector<128x128xf32>
      %c128_i32 = arith.constant 128 : i32
      %30 = arith.muli %14, %c128_i32 : i32
      %31 = tpu.assume_multiple %30, 128 : i32
      %32 = arith.index_cast %31 : i32 to index
      %c0_8 = arith.constant 0 : index
      %33 = vector.load %arg7[%32, %c0_8] : memref<256x128xbf16, #tpu.memory_space<vmem>>, vector<128x128xbf16>
      %c0_9 = arith.constant 0 : index
      %c0_10 = arith.constant 0 : index
      %34 = vector.load %arg9[%c0_9, %c0_10] : memref<128x128xf32, #tpu.memory_space<vmem>>, vector<128x128xf32>
      %35 = arith.truncf %29 : vector<128x128xf32> to vector<128x128xbf16>
      %cst_11 = arith.constant dense<0.000000e+00> : vector<128x128xf32>
      %36 = tpu.matmul %35, %33, %cst_11 {dimension_numbers = #tpu.dot_dimension_numbers<[1], [0], [0], [1], [0, 0, 1, 1], [], []>} : vector<128x128xbf16>, vector<128x128xbf16>, vector<128x128xf32> -> vector<128x128xf32>
      %37 = arith.addf %34, %36 : vector<128x128xf32>
      %c0_12 = arith.constant 0 : index
      %c0_13 = arith.constant 0 : index
      %38 = vector.load %arg9[%c0_12, %c0_13] : memref<128x128xf32, #tpu.memory_space<vmem>>, vector<128x128xf32>
      tpu.vector_store %arg9[%c0_12, %c0_13], %37 {strides = array<i32>} : memref<128x128xf32, #tpu.memory_space<vmem>>, vector<128x128xf32>,
    } else {
    }
    %c1_i32 = arith.constant 1 : i32
    %8 = arith.cmpi eq, %arg1, %c1_i32 : i32
    %9 = arith.extui %8 : i1 to i32
    %c0_i32_2 = arith.constant 0 : i32
    %10 = arith.cmpi ne, %9, %c0_i32_2 : i32
    scf.if %10 {
      %c0 = arith.constant 0 : index
      %c0_3 = arith.constant 0 : index
      %11 = vector.load %arg9[%c0, %c0_3] : memref<128x128xf32, #tpu.memory_space<vmem>>, vector<128x128xf32>
      %c0_4 = arith.constant 0 : index
      %c0_5 = arith.constant 0 : index
      %12 = vector.load %arg8[%c0_4, %c0_5] : memref<128x128xf32, #tpu.memory_space<vmem>>, vector<128x128xf32>
      tpu.vector_store %arg8[%c0_4, %c0_5], %11 {strides = array<i32>} : memref<128x128xf32, #tpu.memory_space<vmem>>, vector<128x128xf32>,
    } else {
    }
    return
  }
  func.func @transform_0(%arg0: i32, %arg1: i32, %arg2: memref<2xi32, #tpu.memory_space<smem>>, %arg3: memref<4xi32, #tpu.memory_space<smem>>) -> (i32, i32) {
    %c0_i32 = arith.constant 0 : i32
    %c0_i32_0 = arith.constant 0 : i32
    return %arg0, %c0_i32 : i32, i32
  }
  func.func @transform_1(%arg0: i32, %arg1: i32, %arg2: memref<2xi32, #tpu.memory_space<smem>>, %arg3: memref<4xi32, #tpu.memory_space<smem>>) -> (i32, i32) {
    %c2_i32 = arith.constant 2 : i32
    %0 = arith.muli %arg0, %c2_i32 : i32
    %1 = arith.addi %0, %arg1 : i32
    %2 = arith.index_cast %1 : i32 to index
    %3 = memref.load %arg3[%2] : memref<4xi32, #tpu.memory_space<smem>>
    %c0_i32 = arith.constant 0 : i32
    %c0_i32_0 = arith.constant 0 : i32
    return %c0_i32, %3 : i32, i32
  }
  func.func @transform_2(%arg0: i32, %arg1: i32, %arg2: memref<2xi32, #tpu.memory_space<smem>>, %arg3: memref<4xi32, #tpu.memory_space<smem>>) -> (i32, i32) {
    %c2_i32 = arith.constant 2 : i32
    %0 = arith.muli %arg0, %c2_i32 : i32
    %1 = arith.addi %0, %arg1 : i32
    %2 = arith.index_cast %1 : i32 to index
    %3 = memref.load %arg3[%2] : memref<4xi32, #tpu.memory_space<smem>>
    %c0_i32 = arith.constant 0 : i32
    return %arg0, %3 : i32, i32
  }
  func.func @transform_3(%arg0: i32, %arg1: i32, %arg2: memref<2xi32, #tpu.memory_space<smem>>, %arg3: memref<4xi32, #tpu.memory_space<smem>>) -> (i32, i32) {
    %c0_i32 = arith.constant 0 : i32
    %c0_i32_0 = arith.constant 0 : i32
    %c0_i32_1 = arith.constant 0 : i32
    return %c0_i32, %c0_i32_0 : i32, i32
  }
  func.func @transform_4(%arg0: i32, %arg1: i32, %arg2: memref<2xi32, #tpu.memory_space<smem>>, %arg3: memref<4xi32, #tpu.memory_space<smem>>) -> (i32, i32) {
    %c0_i32 = arith.constant 0 : i32
    %c0_i32_0 = arith.constant 0 : i32
    return %arg0, %c0_i32 : i32, i32
  }
}

</mosaic_0001>

<bundles_post_ra>
// kernel: tpu_custom_call.1
= control target key start
LH: loop header
LB: loop body
LE: loop exit
PB: predicated region body
PF: predicated region fallthrough
CT: control target
= control target key end

     0   :  { %s1753_s0 = inlined_call_operand.hbm [shape: s32[2], index: 0, kind: input, shape index: {}]   ;;  %s1754_s2 = inlined_call_operand.vmem [shape: f32[256,1], index: 2, kind: input, shape index: {}]   ;;  %s1755_s3 = inlined_call_operand.vmem [shape: f32[1,256], index: 3, kind: input, shape index: {}]   ;;  %s1756_s4 = inlined_call_operand.vmem [shape: s8[256,256], index: 4, kind: input, shape index: {}]   ;;  %s1757_s5 = inlined_call_operand.vmem [shape: bf16[256,128], index: 5, kind: input, shape index: {}]   ;;  %s1758_s6 = inlined_call_operand.hbm [shape: f32[256,128], index: 6, kind: output, shape index: {}]   ;;  %s1759_s1 = inlined_call_operand.vmem [shape: s32[4], index: 1, kind: input, shape index: {}]  }
   0x1   :  { %s1220_s23 = scalar_lea.hbm %s1753_s0, 16 }
   0x2   :  { %p1221_p0 = scmp.ne.s32.totalorder %s1753_s0, %s1220_s23  ;;  %p1224_p1 = scmp.lt.u32.totalorder %s1220_s23, %s1753_s0 }
   0x4   :  { %p1226_p2 = pnand %p1224_p1, %p1221_p0 }
   0x6   :  { %1229 = shalt.err (!%p1226_p2)  }
   0x7   :  { %s1356_s28 = smov [#allocation4]   ;;  %s13_s9 = sshll.u32 %s1759_s1, 4  ;;  %s14_s9 = int_to_ptr.vmem [resolvable:$true] %s13_s9 }
   0x8   :  { %12 = dma.hbm_to_smem %s1753_s0, 16, %s1356_s28, [#allocation3] }
   0x9   :  { %s1230_s10 = scalar_lea.vmem %s14_s9, 16  ;;  %p1235_p4 = scmp.lt.s32.totalorder %s14_s9, %s14_s9 }
   0xa   :  { %p1231_p3 = scmp.ne.s32.totalorder %s14_s9, %s1230_s10  ;;  %p1236_p5 = scmp.lt.s32.totalorder %s1230_s10, %s1230_s10 }
   0xc   :  { %p1237_p6 = por %p1236_p5, %p1235_p4 }
   0xe   :  { %p1238_p7 = pnand %p1237_p6, %p1231_p3 }
  0x10   :  { %1241 = shalt.err (!%p1238_p7)  }
  0x11   :  { %s1357_s11 = smov [#allocation5]  }
  0x12   :  { %16 = dma.vmem_to_smem %s14_s9, 16, %s1357_s11, [#allocation3] }
  0x13   :  { %1310 = dma.done.wait [#allocation3], 32 }
  0x14   :  { %1311 = vsyncadd [#allocation3], 4294967264 }
  0x15   :  { %18 = sfence }
  0x16   :  { %19 = vsyncpa [#allocation8], 0 }
  0x17   :  { %21 = vsyncpa [#allocation8 + $0x1], 0  ;;  %s1413_s0 = smov 0   ;;  %s1415_s12 = smov 0  }
  0x18   :  { %s1417_s1 = smov 0   ;;  %s1419_s13 = smov 0  }
  0x19   :  { %s1421_s14 = smov 0   ;;  %s1423_s15 = smov 0  }
  0x1a   :  { %s1425_s16 = smov 0   ;;  %s1427_s17 = smov 0  }
  0x1b   :  { %s1429_s18 = smov 0   ;;  %s1431_s19 = smov 0  }
  0x1c LB: > { %1763 = sst [smem:[#allocation11_spill]] %s1346_s17  ;;  %s980_s20 = sadd.s32 4294967295, %s1354_s19   ;;  %s1354_s19 = sphi %s1431_s19, %s27_s19   ;;  %s1350_s18 = sphi %s1429_s18, %s1780_s18   ;;  %s1346_s17 = sphi %s1427_s17, %s1772_s17   ;;  %s1342_s16 = sphi %s1425_s16, %s1779_s16   ;;  %s1338_s15 = sphi %s1423_s15, %s1771_s15   ;;  %s1334_s14 = sphi %s1421_s14, %s1778_s14   ;;  %s1330_s13 = sphi %s1419_s13, %s1777_s13   ;;  %s1326_s1 = sphi %s1417_s1, %s1776_s1   ;;  %s1322_s12 = sphi %s1415_s12, %s1775_s12   ;;  %s1318_s0 = sphi %s1413_s0, %s1774_s0  }
  0x1d   : > { %s36_s21 = sadd.s32 1, %s1346_s17  ;;  %s39_s22 = sadd.s32 1, %s1350_s18 }
  0x1e   : > { %p37_p8 = scmp.ge.s32.totalorder %s36_s21, 2  ;;  %s984_s23 = sshll.u32 %s1350_s18, 1 }
  0x1f   : > { %s981_s24 = sadd.s32 4294967294, %s1354_s19   ;;  %s102_s25 = sadd.s32 %s1346_s17, %s984_s23 }
  0x20   : > { %s1782_s21 = smov (%p37_p8, %s36_s21), 0  ;;  %s1784_s22 = smov (!%p37_p8, %s39_s22), %s1350_s18 }
  0x21   : > { %1764 = sst [smem:[#allocation12_spill]] %s1782_s21  ;;  %p119_p9 = scmp.ne.s32.totalorder %s1334_s14, %s1330_s13 }
  0x22   : > { %s103_s26 = sld [smem:[#allocation5 + %s102_s25]]  ;;  %p41_p10 = scmp.ge.s32.totalorder %s1784_s22, 2 }
  0x23   : > { %p120_p11 = scmp.eq.s32.totalorder %s1354_s19, 0  ;;  %s159_s27 = sadd.s32 1, %s1326_s1 }
  0x24   : > { %p169_p12 = scmp.ne.s32.totalorder %s1326_s1, %s1322_s12  ;;  %s1786_s22 = smov (%p41_p10, %s1784_s22), 0 }
  0x25   : > { %1765 = sst [smem:[#allocation13_spill]] %s1786_s22  ;;  %p1480_p13 = por %p120_p11, %p119_p9 }
  0x26   : > { %p170_p0 = scmp.eq.s32.totalorder %s980_s20, 3  ;;  %s985_s29 = sshll.u32 %s1786_s22, 1 }
  0x27   : > { %s107_s30 = ssub.s32 %s1350_s18, %s1786_s22  ;;  %s105_s7 = sadd.s32 %s985_s29, %s1782_s21 }
  0x28   : > { %p157_p1 = scmp.eq.s32.totalorder %s107_s30, 0  ;;  %s106_s8 = sld [smem:[#allocation5 + %s105_s7]] }
  0x29   : > { %p1488_p2 = por %p170_p0, %p169_p12  ;;  %p175_p3 = scmp.ne.s32.totalorder %s1322_s12, %s1318_s0 }
  0x2a   : > { %s1493_s10 = scalar_select %p157_p1, %s1326_s1, %s159_s27  }
  0x2b   : > { %p176_p4 = scmp.eq.s32.totalorder %s981_s24, 3  ;;  %s112_s20 = sadd.s32 1, %s1334_s14 }
  0x2c   : > { %1768 = sst [smem:[#allocation14_spill]] %s1493_s10  ;;  %p987_p7 = scmp.ge.s32.totalorder %s1354_s19, 4 }
  0x2d   : > { %p1497_p5 = por %p176_p4, %p175_p3 }
  0x2e   : > { %s108_s23 = ssub.s32 %s103_s26, %s106_s8  ;;  %195 = sbr.rel (%p987_p7) target bundleno = 65 (0x41), region = 20 }
  0x2f   : > { %s109_s17 = sor.u32 %s108_s23, %s107_s30 }
  0x30   : > { %p110_p6 = scmp.eq.s32.totalorder %s109_s17, 0 }
  0x32   : > { %s1503_s22 = scalar_select %p110_p6, %s1334_s14, %s112_s20  }
  0x35   : > { %219 = sbr.rel (!%p1480_p13) target bundleno = 65 (0x41), region = 32  ;;  %s226_s27 = sld [smem:[#allocation5 + %s102_s25]] (%p1480_p13) }
  0x36   : > { %s221_s24 = sand.u32 (%p1480_p13), 1, %s1334_s14   ;;  %s1019_s29 = sshll.u32 (%p1480_p13), %s1350_s18, 3 }
  0x37   : > { %s988_s7 = sshll.u32 (%p1480_p13), %s221_s24, 5 }
  0x38   : > { %s223_s8 = scalar_lea.vmem (%p1480_p13), [#allocation6], %s988_s7 }
  0x3b   : > { %s229_s21 = sadd.s32 (%p1480_p13), %s1019_s29, %s226_s27 }
  0x3c   : > { %s992_s10 = sshll.u32 %s229_s21, 3 }
  0x3d   : > { %s231_s17 = scalar_lea.vmem %s1756_s4, %s992_s10 }
  0x3e   : > { %v265_v0 = vld [vmem:[%s231_s17] sm:$0xff]  ;;  %v267_v1 = vld [vmem:[%s231_s17 + $0x10] sm:$0xff] }
  0x3f   : > { %v269_v2 = vld [vmem:[%s231_s17 + $0x20] sm:$0xff]  ;;  %266 = vst [vmem:[%s223_s8] sm:$0xff] %v265_v0  ;;  %268 = vst [vmem:[%s223_s8 + $0x8] sm:$0xff] %v267_v1  ;;  %v271_v3 = vld [vmem:[%s231_s17 + $0x30] sm:$0xff] }
  0x40   : > { %270 = vst [vmem:[%s223_s8 + $0x10] sm:$0xff] %v269_v2  ;;  %272 = vst [vmem:[%s223_s8 + $0x18] sm:$0xff] %v271_v3 }
  0x41 PF: > { %p993_p8 = scmp.ge.s32.totalorder %s1354_s19, 1  ;;  %p277_p9 = scmp.lt.s32.totalorder %s1354_s19, 5 }
  0x43   : > { %p278_p10 = pnand %p993_p8, %p277_p9 }
  0x44   : > { %s284_s21 = sand.u32 (!%p278_p10), 1, %s1330_s13   ;;  %s317_s25 = sand.u32 (!%p278_p10), 1, %s1322_s12  }
  0x45   : > { %281 = sbr.rel (%p278_p10) target bundleno = 526 (0x20e), region = 70  ;;  %s994_s28 = sshll.u32 (!%p278_p10), %s284_s21, 5 }
  0x46   : > { %s995_s10 = sshll.u32 (!%p278_p10), %s317_s25, 7  ;;  %s996_s23 = sshll.u32 (!%p278_p10), %s1342_s16, 4 }
  0x47   : > { %s998_s20 = sshll.u32 (!%p278_p10), %s1342_s16, 1  ;;  %p321_p11 = scmp.lt.s32.totalorder (!%p278_p10), %s996_s23, 31 }
  0x48   : > { %s1522_s27 = sadd.s32 (!%p278_p10), %s1338_s15, %s998_s20  ;;  %s1536_s21 = scalar_lea.vmem (!%p278_p10), [#allocation6], %s994_s28 }
  0x49   : > { %s328_s24 = sld [smem:[#allocation5 + %s1522_s27]] (!%p278_p10)  ;;  %s1538_s20 = scalar_lea.vmem (!%p278_p10), [#allocation7], %s995_s10 }
  0x4a   : > { %p999_p13 = scmp.ne.s32.totalorder (!%p278_p10), %s1338_s15, 0 }
  0x4c   : > { %s1788_s23 = smov (!%p321_p11, %s996_s23), 31  ;;  %344 = sbr.rel (%p999_p13) target bundleno = 86 (0x56), region = 78 }
  0x4d   : > { %s997_s29 = sshll.u32 %s1788_s23, 3  ;;  %v1358_v4 = vmov (!%p999_p13), 0.0  }
  0x4e   : > { %s1528_s30 = scalar_lea.vmem %s1754_s2, %s997_s29  ;;  %345 = vst [vmem:[#allocation2] sm:$0xff] (!%p999_p13), %v1358_v4  ;;  %346 = vst [vmem:[#allocation2 + $0x8] sm:$0xff] (!%p999_p13), %v1358_v4 }
  0x4f   : > { %p329_p12 = scmp.lt.s32.totalorder %s328_s24, 1  ;;  %347 = vst [vmem:[#allocation2 + $0x10] sm:$0xff] (!%p999_p13), %v1358_v4  ;;  %348 = vst [vmem:[#allocation2 + $0x18] sm:$0xff] (!%p999_p13), %v1358_v4 }
  0x50   : > { %349 = vst [vmem:[#allocation2 + $0x20] sm:$0xff] (!%p999_p13), %v1358_v4  ;;  %350 = vst [vmem:[#allocation2 + $0x28] sm:$0xff] (!%p999_p13), %v1358_v4 }
  0x51   : > { %s1790_s24 = smov (!%p329_p12, %s328_s24), 1  ;;  %351 = vst [vmem:[#allocation2 + $0x30] sm:$0xff] (!%p999_p13), %v1358_v4  ;;  %352 = vst [vmem:[#allocation2 + $0x38] sm:$0xff] (!%p999_p13), %v1358_v4 }
  0x52   : > { %s331_s8 = scalar_lea.vmem %s1755_s3, %s1790_s24  ;;  %353 = vst [vmem:[#allocation2 + $0x40] sm:$0xff] (!%p999_p13), %v1358_v4  ;;  %354 = vst [vmem:[#allocation2 + $0x48] sm:$0xff] (!%p999_p13), %v1358_v4 }
  0x53   : > { %355 = vst [vmem:[#allocation2 + $0x50] sm:$0xff] %v1358_v4  ;;  %356 = vst [vmem:[#allocation2 + $0x58] sm:$0xff] %v1358_v4 }
  0x54   : > { %357 = vst [vmem:[#allocation2 + $0x60] sm:$0xff] %v1358_v4  ;;  %358 = vst [vmem:[#allocation2 + $0x68] sm:$0xff] %v1358_v4 }
  0x55   : > { %359 = vst [vmem:[#allocation2 + $0x70] sm:$0xff] %v1358_v4  ;;  %360 = vst [vmem:[#allocation2 + $0x78] sm:$0xff] %v1358_v4 }
  0x56 PF: > { %s361_s28 = sld [smem:[#allocation4 + %s1342_s16]] }
  0x5c   : > { %p1000_p0 = scmp.ge.s32.totalorder %s1338_s15, %s361_s28 }
  0x5d   : > { %v377_v5 = vld [vmem:[%s1528_s30 + $0x40] sm:$0xff] (!%p1000_p0)  ;;  %s368_s10 = sld [smem:[#allocation5 + %s1522_s27]] (!%p1000_p0)  ;;  %v1359_v7 = vmov (!%p1000_p0), 0   ;;  %v378_v8 = vld [vmem:[%s1528_s30 + $0x48] sm:$0xff] (!%p1000_p0)  ;;  %v372_v10 = vld [vmem:[%s1528_s30 + $0x18] sm:$0xff] (!%p1000_p0) }
  0x5e   : > { %365 = sbr.rel (%p1000_p0) target bundleno = 491 (0x1eb), region = 82  ;;  %v369_v6 = vld [vmem:[%s1528_s30] sm:$0xff] (!%p1000_p0)  ;;  %1179 = vset.pattern.permute.xlu1 (!%p1000_p0), %v1359_v7  ;;  %1178 = vset.pattern.permute.xlu0 (!%p1000_p0), %v1359_v7  ;;  %v370_v9 = vld [vmem:[%s1528_s30 + $0x8] sm:$0xff] (!%p1000_p0)  ;;  %v371_v11 = vld [vmem:[%s1528_s30 + $0x10] sm:$0xff] (!%p1000_p0) }
  0x5f   : > { %428 = vperm.xlu1 (!%p1000_p0), %1179, %v377_v5   ;;  %388 = vperm.xlu0 (!%p1000_p0), %1178, %v369_v6   ;;  %v380_v12 = vld [vmem:[%s1528_s30 + $0x58] sm:$0xff] (!%p1000_p0)  ;;  %v379_v13 = vld [vmem:[%s1528_s30 + $0x50] sm:$0xff] (!%p1000_p0)  ;;  %v374_v16 = vld [vmem:[%s1528_s30 + $0x28] sm:$0xff] (!%p1000_p0) }
  0x60   : > { %v373_v17 = vld [vmem:[%s1528_s30 + $0x20] sm:$0xff] (!%p1000_p0)  ;;  %v382_v19 = vld [vmem:[%s1528_s30 + $0x68] sm:$0xff] (!%p1000_p0)  ;;  %v376_v22 = vld [vmem:[%s1528_s30 + $0x38] sm:$0xff] (!%p1000_p0) }
  0x61   : > { %v381_v20 = vld [vmem:[%s1528_s30 + $0x60] sm:$0xff] (!%p1000_p0)  ;;  %v375_v23 = vld [vmem:[%s1528_s30 + $0x30] sm:$0xff] (!%p1000_p0)  ;;  %v384_v25 = vld [vmem:[%s1528_s30 + $0x78] sm:$0xff] (!%p1000_p0) }
  0x62   : > { %v383_v26 = vld [vmem:[%s1528_s30 + $0x70] sm:$0xff] (!%p1000_p0)  ;;  %v1578_v30 = vld [vmem:[%s331_s8] ss:$0 sm:$0xff] (!%p1000_p0) }
  0x63   : > { %433 = vperm.xlu1 (!%p1000_p0), %1179, %v378_v8   ;;  %393 = vperm.xlu0 (!%p1000_p0), %1178, %v370_v9   ;;  %s1003_s23 = sshll.u32 (!%p1000_p0), %s368_s10, 7  ;;  %v552_v42 = vld [vmem:[%s1536_s21] sm:$0xff] (!%p1000_p0)  ;;  %v554_v46 = vld [vmem:[%s1536_s21 + $0x10] sm:$0xff] (!%p1000_p0) }
  0x64   : > { %s605_s29 = sshra.s32 (!%p1000_p0), %s1003_s23, 3  ;;  %v556_v49 = vunpack.c.0.s8 (!%p1000_p0), %v552_v42  ;;  %v557_v51 = vunpack.c.1.s8 (!%p1000_p0), %v552_v42  ;;  %v564_v52 = vunpack.c.0.s8 (!%p1000_p0), %v554_v46  ;;  %v559_v53 = vunpack.c.3.s8 (!%p1000_p0), %v552_v42 }
  0x65   : > { %s1004_s7 = sshll.u32 %s605_s29, 2  ;;  %v565_v57 = vunpack.c.1.s8 %v554_v46  ;;  %v558_v58 = vunpack.c.2.s8 %v552_v42  ;;  %v567_v59 = vunpack.c.3.s8 %v554_v46  ;;  %v566_v1 = vunpack.c.2.s8 %v554_v46 }
  0x66   : > { %s1555_s13 = scalar_lea.vmem %s1757_s5, %s1004_s7  ;;  %v572_v62 = vcvt.s32.f32 %v556_v49  ;;  %v573_v2 = vcvt.s32.f32 %v557_v51  ;;  %v580_v3 = vcvt.s32.f32 %v564_v52  ;;  %v575_v5 = vcvt.s32.f32 %v559_v53  ;;  %v1634_v51 = vld [vmem:[%s1536_s21 + $0x18] sm:$0xff] }
  0x67   : > { %403 = vperm.xlu1 %1179, %v372_v10   ;;  %398 = vperm.xlu0 %1178, %v371_v11   ;;  %v1180_v14 = vld [vmem:[%s1555_s13] sm:$0xff]   ;;  %v1181_v15 = vld [vmem:[%s1555_s13 + $0x8] sm:$0xff]   ;;  %v1182_v18 = vld [vmem:[%s1555_s13 + $0x10] sm:$0xff]   ;;  %v581_v9 = vcvt.s32.f32 %v565_v57  ;;  %v574_v10 = vcvt.s32.f32 %v558_v58  ;;  %v1604_v11 = vcvt.s32.f32 %v567_v59 }
  0x68   : > { %1037 = vmatprep.subr.bf16.mxu0 %v1180_v14  ;;  %1069 = vmatprep.subr.bf16.mxu1 %v1180_v14  ;;  %v1183_v21 = vld [vmem:[%s1555_s13 + $0x18] sm:$0xff]   ;;  %v1184_v24 = vld [vmem:[%s1555_s13 + $0x20] sm:$0xff]   ;;  %v1185_v27 = vld [vmem:[%s1555_s13 + $0x28] sm:$0xff]  }
  0x69   : > { %1038 = vmatpush3.bf16.msra.mxu0 %v1180_v14  ;;  %1077 = vmatpush3.bf16.msra.mxu1 %v1180_v14  ;;  %v1186_v28 = vld [vmem:[%s1555_s13 + $0x30] sm:$0xff]   ;;  %v1187_v29 = vld [vmem:[%s1555_s13 + $0x38] sm:$0xff]  }
  0x6a   : > { %1039 = vmatprep.subr.bf16.mxu0 %v1181_v15  ;;  %1070 = vmatprep.subr.bf16.mxu1 %v1181_v15 }
  0x6b   : > { %443 = vperm.xlu1 %1179, %v380_v12   ;;  %438 = vperm.xlu0 %1178, %v379_v13   ;;  %v1607_v12 = vld [vmem:[%s1536_s21 + $0x8] sm:$0xff] }
  0x6d   : > { %1040 = vmatpush3.bf16.msra.mxu0 %v1181_v15  ;;  %1078 = vmatpush3.bf16.msra.mxu1 %v1181_v15 }
  0x6e   : > { %1041 = vmatprep.subr.bf16.mxu0 %v1182_v18  ;;  %1071 = vmatprep.subr.bf16.mxu1 %v1182_v18 }
  0x6f   : > { %413 = vperm.xlu1 %1179, %v374_v16   ;;  %408 = vperm.xlu0 %1178, %v373_v17  }
  0x71   : > { %1042 = vmatpush3.bf16.msra.mxu0 %v1182_v18  ;;  %1079 = vmatpush3.bf16.msra.mxu1 %v1182_v18 }
  0x72   : > { %1043 = vmatprep.subr.bf16.mxu0 %v1183_v21  ;;  %1072 = vmatprep.subr.bf16.mxu1 %v1183_v21 }
  0x73   : > { %453 = vperm.xlu1 %1179, %v382_v19   ;;  %448 = vperm.xlu0 %1178, %v381_v20  }
  0x75   : > { %1044 = vmatpush3.bf16.msra.mxu0 %v1183_v21  ;;  %1080 = vmatpush3.bf16.msra.mxu1 %v1183_v21  ;;  %v582_v21 = vcvt.s32.f32 %v566_v1 }
  0x76   : > { %1045 = vmatprep.subr.bf16.mxu0 %v1184_v24  ;;  %1073 = vmatprep.subr.bf16.mxu1 %v1184_v24 }
  0x77   : > { %423 = vperm.xlu1 %1179, %v376_v22   ;;  %418 = vperm.xlu0 %1178, %v375_v23  }
  0x79   : > { %1046 = vmatpush3.bf16.msra.mxu0 %v1184_v24  ;;  %1081 = vmatpush3.bf16.msra.mxu1 %v1184_v24 }
  0x7a   : > { %1047 = vmatprep.subr.bf16.mxu0 %v1185_v27  ;;  %1074 = vmatprep.subr.bf16.mxu1 %v1185_v27 }
  0x7b   : > { %463 = vperm.xlu1 %1179, %v384_v25   ;;  %458 = vperm.xlu0 %1178, %v383_v26   ;;  %v561_v26 = vunpack.c.1.s8 %v1607_v12 }
  0x7d   : > { %1048 = vmatpush3.bf16.msra.mxu0 %v1185_v27  ;;  %1082 = vmatpush3.bf16.msra.mxu1 %v1185_v27 }
  0x7e   : > { %1049 = vmatprep.subr.bf16.mxu0 %v1186_v28  ;;  %1075 = vmatprep.subr.bf16.mxu1 %v1186_v28 }
  0x81   : > { %1050 = vmatpush3.bf16.msra.mxu0 %v1186_v28  ;;  %1083 = vmatpush3.bf16.msra.mxu1 %v1186_v28 }
  0x82   : > { %1051 = vmatprep.subr.bf16.mxu0 %v1187_v29  ;;  %1076 = vmatprep.subr.bf16.mxu1 %v1187_v29 }
  0x85   : > { %1052 = vmatpush3.bf16.msra.mxu0 %v1187_v29  ;;  %1084 = vmatpush3.bf16.msra.mxu1 %v1187_v29 }
  0xde   : > { %v429_v31 = vpop.permute.xlu1 %428  ;;  %v389_v32 = vpop.permute.xlu0 %388 }
  0xdf   : > { %v496_v33 = vmul.f32 %v1578_v30, %v429_v31  ;;  %v488_v34 = vmul.f32 %v1578_v30, %v389_v32  ;;  %v480_v4 = vadd.f32 %v1578_v30, %v429_v31  ;;  %v472_v19 = vadd.f32 %v1578_v30, %v389_v32 }
  0xe1   : > { %v512_v35 = vadd.f32 1.0, %v496_v33  ;;  %v504_v36 = vadd.f32 1.0, %v488_v34 }
  0xe2   : > { %v434_v37 = vpop.permute.xlu1 %433  ;;  %v394_v38 = vpop.permute.xlu0 %393 }
  0xe3   : > { %1188 = vrcp.f32 %v512_v35  ;;  %v497_v39 = vmul.f32 %v1578_v30, %v434_v37  ;;  %v489_v40 = vmul.f32 %v1578_v30, %v394_v38  ;;  %v481_v16 = vadd.f32 %v1578_v30, %v434_v37 }
  0xe4   : > { %1190 = vrcp.f32 %v504_v36  ;;  %v473_v20 = vadd.f32 %v1578_v30, %v394_v38 }
  0xe5   : > { %v513_v41 = vadd.f32 1.0, %v497_v39  ;;  %v505_v43 = vadd.f32 1.0, %v489_v40  ;;  %v560_v39 = vunpack.c.0.s8 %v1607_v12 }
  0xe6   : > { %v404_v44 = vpop.permute.xlu1 %403  ;;  %v1585_v45 = vpop.permute.xlu0 %398 }
  0xe7   : > { %1192 = vrcp.f32 %v513_v41  ;;  %v491_v47 = vmul.f32 %v1578_v30, %v404_v44  ;;  %v490_v48 = vmul.f32 %v1578_v30, %v1585_v45  ;;  %v475_v25 = vadd.f32 %v1578_v30, %v404_v44 }
  0xe8   : > { %1194 = vrcp.f32 %v505_v43  ;;  %v474_v38 = vadd.f32 %v1578_v30, %v1585_v45  ;;  %v577_v44 = vcvt.s32.f32 %v561_v26  ;;  %v563_v26 = vunpack.c.3.s8 %v1607_v12 }
  0xe9   : > { %v507_v50 = vadd.f32 1.0, %v491_v47  ;;  %v506_v54 = vadd.f32 1.0, %v490_v48 }
  0xea   : > { %v1591_v55 = vpop.permute.xlu1 %443  ;;  %v1593_v56 = vpop.permute.xlu0 %438 }
  0xeb   : > { %1196 = vrcp.f32 %v507_v50  ;;  %v499_v60 = vmul.f32 %v1578_v30, %v1591_v55  ;;  %v498_v61 = vmul.f32 %v1578_v30, %v1593_v56  ;;  %v483_v53 = vadd.f32 %v1578_v30, %v1591_v55 }
  0xec   : > { %1198 = vrcp.f32 %v506_v54  ;;  %v482_v54 = vadd.f32 %v1578_v30, %v1593_v56  ;;  %v568_v56 = vunpack.c.0.s8 %v1634_v51 }
  0xed   : > { %v1189_v63 = vpop.eup %1188  ;;  %v515_v0 = vadd.f32 1.0, %v499_v60  ;;  %v514_v6 = vadd.f32 1.0, %v498_v61 }
  0xee   : > { %v1600_v7 = vpop.permute.xlu1 %413  ;;  %v1602_v8 = vpop.permute.xlu0 %408  ;;  %v544_v15 = vmul.f32 %v1189_v63, %v480_v4 }
  0xef   : > { %1200 = vrcp.f32 %v515_v0  ;;  %v493_v13 = vmul.f32 %v1578_v30, %v1600_v7  ;;  %v1191_v14 = vpop.eup %1190  ;;  %v492_v17 = vmul.f32 %v1578_v30, %v1602_v8 }
  0xf0   : > { %1202 = vrcp.f32 %v514_v6  ;;  %v536_v31 = vmul.f32 %v1191_v14, %v472_v19  ;;  %v596_v35 = vmul.f32 %v580_v3, %v544_v15 }
  0xf1   : > { %v1193_v18 = vpop.eup %1192  ;;  %v509_v22 = vadd.f32 1.0, %v493_v13  ;;  %v508_v27 = vadd.f32 1.0, %v492_v17 }
  0xf2   : > { %v1195_v23 = vpop.eup %1194  ;;  %v545_v24 = vmul.f32 %v1193_v18, %v481_v16  ;;  %v1618_v28 = vpop.permute.xlu1 %453  ;;  %v588_v52 = vmul.f32 %v572_v62, %v536_v31  ;;  %v569_v62 = vunpack.c.1.s8 %v1634_v51  ;;  %v476_v16 = vadd.f32 %v1578_v30, %v1602_v8 }
  0xf3   : > { %v1620_v29 = vpop.permute.xlu0 %448  ;;  %v537_v33 = vmul.f32 %v1195_v23, %v473_v20  ;;  %1204 = vrcp.f32 %v509_v22  ;;  %v501_v32 = vmul.f32 %v1578_v30, %v1618_v28  ;;  %v584_v8 = vcvt.s32.f32 %v568_v56  ;;  %v626_v56 = vld [vmem:[#allocation2 + $0x8] sm:$0xff] }
  0xf4   : > { %1206 = vrcp.f32 %v508_v27  ;;  %v500_v34 = vmul.f32 %v1578_v30, %v1620_v29  ;;  %v597_v36 = vmul.f32 %v581_v9, %v545_v24  ;;  %v585_v24 = vcvt.s32.f32 %v569_v62  ;;  %v628_v62 = vld [vmem:[#allocation2 + $0x18] sm:$0xff] }
  0xf5   : > { %v1197_v37 = vpop.eup %1196  ;;  %v517_v40 = vadd.f32 1.0, %v501_v32  ;;  %v589_v41 = vmul.f32 %v573_v2, %v537_v33  ;;  %v576_v2 = vcvt.s32.f32 %v560_v39  ;;  %v484_v31 = vadd.f32 %v1578_v30, %v1620_v29 }
  0xf6   : > { %v1199_v42 = vpop.eup %1198  ;;  %v539_v43 = vmul.f32 %v1197_v37, %v475_v25  ;;  %v516_v46 = vadd.f32 1.0, %v500_v34  ;;  %v1629_v47 = vpop.permute.xlu1 %423  ;;  %v645_v49 = vpack.c.bf16 %v597_v36, %v596_v35  ;;  %v562_v33 = vunpack.c.2.s8 %v1607_v12 }
  0xf7   : > { %v1631_v48 = vpop.permute.xlu0 %418  ;;  %v538_v50 = vmul.f32 %v1199_v42, %v474_v38  ;;  %1208 = vrcp.f32 %v517_v40  ;;  %v495_v45 = vmul.f32 %v1578_v30, %v1629_v47  ;;  %v641_v63 = vpack.c.bf16 %v589_v41, %v588_v52 }
  0xf8   : > { %1210 = vrcp.f32 %v516_v46  ;;  %v494_v57 = vmul.f32 %v1578_v30, %v1631_v48  ;;  %1061 = vmatprep.mubr.bf16.mxu1 %v645_v49  ;;  %v591_v59 = vmul.f32 %v575_v5, %v539_v43  ;;  %v579_v38 = vcvt.s32.f32 %v563_v26  ;;  %v632_v26 = vld [vmem:[#allocation2 + $0x38] sm:$0xff] }
  0xf9   : > { %v1201_v58 = vpop.eup %1200  ;;  %v590_v60 = vmul.f32 %v574_v10, %v538_v50  ;;  %v511_v61 = vadd.f32 1.0, %v495_v45  ;;  %1053 = vmatprep.mubr.bf16.mxu0 %v641_v63  ;;  %v477_v10 = vadd.f32 %v1578_v30, %v1600_v7  ;;  %v485_v7 = vadd.f32 %v1578_v30, %v1618_v28 }
  0xfa   : > { %v1203_v0 = vpop.eup %1202  ;;  %v547_v1 = vmul.f32 %v1201_v58, %v483_v53  ;;  %v510_v3 = vadd.f32 1.0, %v494_v57  ;;  %v464_v55 = vpop.permute.xlu1 %463  ;;  %v479_v28 = vadd.f32 %v1578_v30, %v1629_v47  ;;  %v571_v39 = vunpack.c.3.s8 %v1634_v51 }
  0xfb   : > { %v459_v4 = vpop.permute.xlu0 %458  ;;  %v546_v6 = vmul.f32 %v1203_v0, %v482_v54  ;;  %1212 = vrcp.f32 %v511_v61  ;;  %v503_v9 = vmul.f32 %v1578_v30, %v464_v55  ;;  %v642_v18 = vpack.c.bf16 %v591_v59, %v590_v60  ;;  %v627_v0 = vld [vmem:[#allocation2 + $0x10] sm:$0xff] }
  0xfc   : > { %v599_v5 = vmul.f32 %v1604_v11, %v547_v1  ;;  %1214 = vrcp.f32 %v510_v3  ;;  %v502_v13 = vmul.f32 %v1578_v30, %v459_v4  ;;  %v578_v42 = vcvt.s32.f32 %v562_v33  ;;  %v625_v1 = vld [vmem:[#allocation2] sm:$0xff]  ;;  %v635_v3 = vld [vmem:[#allocation2 + $0x50] sm:$0xff] }
  0xfd   : > { %v1205_v14 = vpop.eup %1204  ;;  %v598_v15 = vmul.f32 %v582_v21, %v546_v6  ;;  %v519_v17 = vadd.f32 1.0, %v503_v9  ;;  %1054 = vmatmul.mubr.bf16.vlgmr.msra.gmra.mrb[0].mxu0 %v642_v18  ;;  %v478_v29 = vadd.f32 %v1578_v30, %v1631_v48  ;;  %v570_v12 = vunpack.c.2.s8 %v1634_v51  ;;  %v633_v9 = vld [vmem:[#allocation2 + $0x40] sm:$0xff] }
  0xfe   : > { %v1207_v19 = vpop.eup %1206  ;;  %v541_v20 = vmul.f32 %v1205_v14, %v477_v10  ;;  %v518_v22 = vadd.f32 1.0, %v502_v13  ;;  %v587_v45 = vcvt.s32.f32 %v571_v39  ;;  %v487_v52 = vadd.f32 %v1578_v30, %v464_v55  ;;  %v636_v10 = vld [vmem:[#allocation2 + $0x58] sm:$0xff] }
  0xff   : > { %v540_v23 = vmul.f32 %v1207_v19, %v476_v16  ;;  %1216 = vrcp.f32 %v519_v17  ;;  %v646_v11 = vpack.c.bf16 %v599_v5, %v598_v15  ;;  %v586_v54 = vcvt.s32.f32 %v570_v12  ;;  %v634_v17 = vld [vmem:[#allocation2 + $0x48] sm:$0xff] }
 0x100   : > { %v593_v25 = vmul.f32 %v577_v44, %v541_v20  ;;  %1218 = vrcp.f32 %v518_v22  ;;  %v486_v57 = vadd.f32 %v1578_v30, %v459_v4 }
 0x101   : > { %v1209_v21 = vpop.eup %1208  ;;  %v592_v27 = vmul.f32 %v576_v2, %v540_v23  ;;  %1062 = vmatmul.mubr.bf16.vlgmr.msra.gmra.mrb[0].mxu1 %v646_v11  ;;  %v631_v11 = vld [vmem:[#allocation2 + $0x30] sm:$0xff] }
 0x102   : > { %v1211_v32 = vpop.eup %1210  ;;  %v549_v34 = vmul.f32 %v1209_v21, %v485_v7 }
 0x103   : > { %v548_v35 = vmul.f32 %v1211_v32, %v484_v31  ;;  %v643_v36 = vpack.c.bf16 %v593_v25, %v592_v27  ;;  %v629_v25 = vld [vmem:[#allocation2 + $0x20] sm:$0xff]  ;;  %v639_v32 = vld [vmem:[#allocation2 + $0x70] sm:$0xff] }
 0x104   : > { %v601_v37 = vmul.f32 %v585_v24, %v549_v34 }
 0x105   : > { %v1213_v40 = vpop.eup %1212  ;;  %v600_v41 = vmul.f32 %v584_v8, %v548_v35  ;;  %1057 = vmatprep.mubr.bf16.mxu0 %v643_v36  ;;  %v630_v8 = vld [vmem:[#allocation2 + $0x28] sm:$0xff]  ;;  %v637_v36 = vld [vmem:[#allocation2 + $0x60] sm:$0xff] }
 0x106   : > { %v1215_v43 = vpop.eup %1214  ;;  %v543_v44 = vmul.f32 %v1213_v40, %v479_v28  ;;  %v640_v28 = vld [vmem:[#allocation2 + $0x78] sm:$0xff] }
 0x107   : > { %v542_v46 = vmul.f32 %v1215_v43, %v478_v29  ;;  %v647_v49 = vpack.c.bf16 %v601_v37, %v600_v41  ;;  %v638_v41 = vld [vmem:[#allocation2 + $0x68] sm:$0xff] }
 0x108   : > { %v595_v50 = vmul.f32 %v579_v38, %v543_v44 }
 0x109   : > { %v1217_v47 = vpop.eup %1216  ;;  %v594_v53 = vmul.f32 %v578_v42, %v542_v46  ;;  %1065 = vmatprep.mubr.bf16.mxu1 %v647_v49 }
 0x10a   : > { %v1219_v58 = vpop.eup %1218  ;;  %v551_v59 = vmul.f32 %v1217_v47, %v487_v52 }
 0x10b   : > { %v550_v48 = vmul.f32 %v1219_v58, %v486_v57  ;;  %v644_v60 = vpack.c.bf16 %v595_v50, %v594_v53 }
 0x10c   : > { %v603_v51 = vmul.f32 %v587_v45, %v551_v59 }
 0x10d   : > { %v602_v61 = vmul.f32 %v586_v54, %v550_v48  ;;  %1058 = vmatmul.mubr.bf16.gmra.mrb[4].mxu0 %v644_v60 }
 0x10f   : > { %v648_v63 = vpack.c.bf16 %v603_v51, %v602_v61 }
 0x111   : > { %1066 = vmatmul.mubr.bf16.gmra.mrb[4].mxu1 %v648_v63 }
 0x1d0   : > { %v1055_v2 = vpop.f32.mrb[0].mxu0 }
 0x1d1   : > { %v796_v55 = vadd.f32 %v1055_v2, %v627_v0  ;;  %v731_v6 = vpop.f32.mrb[1].mxu0 }
 0x1d2   : > { %v794_v30 = vadd.f32 %v731_v6, %v625_v1  ;;  %v1056_v4 = vpop.f32.mrb[2].mxu0 }
 0x1d3   : > { %812 = vst [vmem:[#allocation2 + $0x10] sm:$0xff] %v796_v55  ;;  %v797_v13 = vadd.f32 %v1056_v4, %v628_v62  ;;  %v734_v14 = vpop.f32.mrb[3].mxu0 }
 0x1d4   : > { %v1063_v5 = vpop.f32.mrb[0].mxu1  ;;  %810 = vst [vmem:[#allocation2] sm:$0xff] %v794_v30  ;;  %v795_v18 = vadd.f32 %v734_v14, %v626_v56 }
 0x1d5   : > { %v804_v15 = vadd.f32 %v1063_v5, %v635_v3  ;;  %v763_v16 = vpop.f32.mrb[1].mxu1  ;;  %813 = vst [vmem:[#allocation2 + $0x18] sm:$0xff] %v797_v13 }
 0x1d6   : > { %v802_v19 = vadd.f32 %v763_v16, %v633_v9  ;;  %v1064_v20 = vpop.f32.mrb[2].mxu1  ;;  %811 = vst [vmem:[#allocation2 + $0x8] sm:$0xff] %v795_v18 }
 0x1d7   : > { %820 = vst [vmem:[#allocation2 + $0x50] sm:$0xff] %v804_v15  ;;  %v805_v22 = vadd.f32 %v1064_v20, %v636_v10  ;;  %v766_v23 = vpop.f32.mrb[3].mxu1 }
 0x1d8   : > { %818 = vst [vmem:[#allocation2 + $0x40] sm:$0xff] %v802_v19  ;;  %v803_v24 = vadd.f32 %v766_v23, %v634_v17 }
 0x1d9   : > { %821 = vst [vmem:[#allocation2 + $0x58] sm:$0xff] %v805_v22 }
 0x1da   : > { %819 = vst [vmem:[#allocation2 + $0x48] sm:$0xff] %v803_v24 }
 0x1e0   : > { %v1059_v7 = vpop.f32.mrb[4].mxu0 }
 0x1e1   : > { %v800_v21 = vadd.f32 %v1059_v7, %v631_v11  ;;  %v747_v27 = vpop.f32.mrb[5].mxu0 }
 0x1e2   : > { %v798_v31 = vadd.f32 %v747_v27, %v629_v25  ;;  %v1060_v33 = vpop.f32.mrb[6].mxu0 }
 0x1e3   : > { %816 = vst [vmem:[#allocation2 + $0x30] sm:$0xff] %v800_v21  ;;  %v801_v34 = vadd.f32 %v1060_v33, %v632_v26  ;;  %v750_v35 = vpop.f32.mrb[7].mxu0 }
 0x1e4   : > { %814 = vst [vmem:[#allocation2 + $0x20] sm:$0xff] %v798_v31  ;;  %v799_v37 = vadd.f32 %v750_v35, %v630_v8  ;;  %v1067_v38 = vpop.f32.mrb[4].mxu1 }
 0x1e5   : > { %817 = vst [vmem:[#allocation2 + $0x38] sm:$0xff] %v801_v34  ;;  %v808_v39 = vadd.f32 %v1067_v38, %v639_v32  ;;  %v779_v40 = vpop.f32.mrb[5].mxu1 }
 0x1e6   : > { %815 = vst [vmem:[#allocation2 + $0x28] sm:$0xff] %v799_v37  ;;  %v806_v42 = vadd.f32 %v779_v40, %v637_v36  ;;  %v1068_v29 = vpop.f32.mrb[6].mxu1 }
 0x1e7   : > { %824 = vst [vmem:[#allocation2 + $0x70] sm:$0xff] %v808_v39  ;;  %v809_v12 = vadd.f32 %v1068_v29, %v640_v28  ;;  %v782_v43 = vpop.f32.mrb[7].mxu1 }
 0x1e8   : > { %822 = vst [vmem:[#allocation2 + $0x60] sm:$0xff] %v806_v42  ;;  %v807_v44 = vadd.f32 %v782_v43, %v638_v41 }
 0x1e9   : > { %825 = vst [vmem:[#allocation2 + $0x78] sm:$0xff] %v809_v12 }
 0x1ea   : > { %823 = vst [vmem:[#allocation2 + $0x68] sm:$0xff] %v807_v44 }
 0x1eb PF: > { %p1013_p1 = scmp.ne.s32.totalorder %s1338_s15, 1 }
 0x1ec   : > { %v830_v46 = vld [vmem:[#allocation2] sm:$0xff] (!%p1013_p1)  ;;  %v831_v49 = vld [vmem:[#allocation2 + $0x8] sm:$0xff] (!%p1013_p1)  ;;  %v832_v50 = vld [vmem:[#allocation2 + $0x10] sm:$0xff] (!%p1013_p1) }
 0x1ed   : > { %829 = sbr.rel (%p1013_p1) target bundleno = 501 (0x1f5), region = 86  ;;  %846 = vst [vmem:[%s1538_s20] sm:$0xff] (!%p1013_p1), %v830_v46  ;;  %847 = vst [vmem:[%s1538_s20 + $0x8] sm:$0xff] (!%p1013_p1), %v831_v49  ;;  %v833_v45 = vld [vmem:[#allocation2 + $0x18] sm:$0xff] (!%p1013_p1)  ;;  %v834_v52 = vld [vmem:[#allocation2 + $0x20] sm:$0xff] (!%p1013_p1) }
 0x1ee   : > { %848 = vst [vmem:[%s1538_s20 + $0x10] sm:$0xff] (!%p1013_p1), %v832_v50  ;;  %v835_v47 = vld [vmem:[#allocation2 + $0x28] sm:$0xff] (!%p1013_p1)  ;;  %849 = vst [vmem:[%s1538_s20 + $0x18] sm:$0xff] (!%p1013_p1), %v833_v45  ;;  %v836_v53 = vld [vmem:[#allocation2 + $0x30] sm:$0xff] (!%p1013_p1) }
 0x1ef   : > { %850 = vst [vmem:[%s1538_s20 + $0x20] sm:$0xff] (!%p1013_p1), %v834_v52  ;;  %851 = vst [vmem:[%s1538_s20 + $0x28] sm:$0xff] (!%p1013_p1), %v835_v47  ;;  %v837_v54 = vld [vmem:[#allocation2 + $0x38] sm:$0xff] (!%p1013_p1)  ;;  %v838_v57 = vld [vmem:[#allocation2 + $0x40] sm:$0xff] (!%p1013_p1) }
 0x1f0   : > { %852 = vst [vmem:[%s1538_s20 + $0x30] sm:$0xff] (!%p1013_p1), %v836_v53  ;;  %853 = vst [vmem:[%s1538_s20 + $0x38] sm:$0xff] (!%p1013_p1), %v837_v54  ;;  %v839_v58 = vld [vmem:[#allocation2 + $0x48] sm:$0xff] (!%p1013_p1)  ;;  %v840_v59 = vld [vmem:[#allocation2 + $0x50] sm:$0xff] (!%p1013_p1) }
 0x1f1   : > { %854 = vst [vmem:[%s1538_s20 + $0x40] sm:$0xff] (!%p1013_p1), %v838_v57  ;;  %v841_v48 = vld [vmem:[#allocation2 + $0x58] sm:$0xff] (!%p1013_p1)  ;;  %855 = vst [vmem:[%s1538_s20 + $0x48] sm:$0xff] (!%p1013_p1), %v839_v58  ;;  %v842_v60 = vld [vmem:[#allocation2 + $0x60] sm:$0xff] (!%p1013_p1) }
 0x1f2   : > { %856 = vst [vmem:[%s1538_s20 + $0x50] sm:$0xff] (!%p1013_p1), %v840_v59  ;;  %857 = vst [vmem:[%s1538_s20 + $0x58] sm:$0xff] (!%p1013_p1), %v841_v48  ;;  %v843_v51 = vld [vmem:[#allocation2 + $0x68] sm:$0xff] (!%p1013_p1)  ;;  %v844_v61 = vld [vmem:[#allocation2 + $0x70] sm:$0xff] (!%p1013_p1) }
 0x1f3   : > { %858 = vst [vmem:[%s1538_s20 + $0x60] sm:$0xff] (!%p1013_p1), %v842_v60  ;;  %859 = vst [vmem:[%s1538_s20 + $0x68] sm:$0xff] (!%p1013_p1), %v843_v51  ;;  %v845_v63 = vld [vmem:[#allocation2 + $0x78] sm:$0xff] (!%p1013_p1) }
 0x1f4   : > { %860 = vst [vmem:[%s1538_s20 + $0x70] sm:$0xff] %v844_v61  ;;  %861 = vst [vmem:[%s1538_s20 + $0x78] sm:$0xff] %v845_v63 }
 0x1f5 PF: > { %s1020_s15 = sshll.u32 %s1342_s16, 11  ;;  %s876_s28 = sshll.u32 %s1538_s20, 4  ;;  %s1691_s28 = int_to_ptr.vmem [resolvable:$true] %s876_s28 }
 0x1f6   : > { %s1688_s21 = scalar_lea.hbm %s1758_s6, %s1020_s15  ;;  %s1695_s10 = scalar_lea.sflag [#allocation8], %s317_s25 }
 0x1f7   : > { %s1242_s23 = scalar_lea.vmem %s1691_s28, 2048  ;;  %s1360_s16 = smov [#allocation7]  }
 0x1f8   : > { %p1243_p3 = scmp.ne.s32.totalorder %s1691_s28, %s1242_s23  ;;  %s1246_s29 = sshll.u32 %s1360_s16, 4  ;;  %s1247_s29 = int_to_ptr.vmem [resolvable:$false] %s1246_s29 }
 0x1f9   : > { %s1248_s7 = scalar_lea.vmem %s1247_s29, 4096  ;;  %p1249_p7 = scmp.lt.s32.totalorder %s1691_s28, %s1247_s29 }
 0x1fa   : > { %p1244_p4 = pnand %p1243_p3, %p1488_p2  ;;  %p1250_p8 = scmp.lt.s32.totalorder %s1248_s7, %s1242_s23 }
 0x1fc   : > { %p1245_p6 = pneg %p1244_p4  ;;  %p1251_p9 = por %p1250_p8, %p1249_p7 }
 0x1fe   : > { %p1252_p10 = pnand %p1251_p9, %p1245_p6 }
 0x200   : > { %1255 = shalt.err (!%p1252_p10)
}
 0x201   : > { %s1256_s25 = scalar_lea.hbm %s1688_s21, 2048  ;;  %s1260_s26 = scalar_lea.hbm %s1758_s6, 4096 }
 0x202   : > { %p1257_p11 = scmp.ne.s32.totalorder %s1688_s21, %s1256_s25  ;;  %p1261_p0 = scmp.lt.u32.totalorder %s1688_s21, %s1758_s6 }
 0x203   : > { %p1262_p1 = scmp.lt.u32.totalorder %s1260_s26, %s1256_s25  ;;  %p1264_p4 = scmp.lt.u32.totalorder %s1256_s25, %s1688_s21 }
 0x204   : > { %p1258_p12 = pnand %p1257_p11, %p1488_p2 }
 0x205   : > { %p1263_p3 = por %p1262_p1, %p1261_p0 }
 0x206   : > { %p1259_p13 = pneg %p1258_p12 }
 0x207   : > { %p1265_p6 = por %p1264_p4, %p1263_p3 }
 0x209   : > { %p1266_p7 = pnand %p1265_p6, %p1259_p13 }
 0x20b   : > { %1269 = shalt.err (!%p1266_p7)
}
 0x20c   : > { %s1361_s17 = smov 128   ;;  %s1362_s15 = smov 8  }
 0x20d   : > { %1085 = dma.vmem_to_hbm [thread:$0]  (%p1488_p2), %s1691_s28, 2048, %s1688_s21, %s1695_s10, %s1361_s17, %s1361_s17, %s1362_s15  }
 0x20e PF: > { %p1091_p8 = scmp.ge.s32.totalorder %s1354_s19, 2  ;;  %s891_s24 = sand.u32 1, %s1318_s0  }
 0x20f   : > { %s892_s8 = scalar_lea.sflag [#allocation8], %s891_s24 }
 0x210   : > { %p1088_p9 = pnand %p1091_p8, %p1497_p5 }
 0x212   : > { %1313 = dma.done.wait (!%p1088_p9), %s892_s8, 2048  }
 0x213   : > { %1315 = vsyncadd (!%p1088_p9), %s892_s8, 4294965248  ;;  %s27_s19 = sadd.s32 1, %s1354_s19   ;;  %s1770_s23 = sld [smem:[#allocation14_spill]] }
 0x214   : > { %p24_p10 = scmp.ge.s32.totalorder %s27_s19, 6   ;;  %s1771_s15 = sld [smem:[#allocation11_spill]] }
 0x215   : > { %s1772_s17 = sld [smem:[#allocation12_spill]]  ;;  %s1773_s9 = sld [smem:[#allocation13_spill]] }
 0x216   : > { %s1774_s0 = smov %s1322_s12  ;;  %s1775_s12 = smov %s1326_s1 }
 0x217   : > { %s1777_s13 = smov %s1334_s14  ;;  %s1778_s14 = smov %s1503_s22 }
 0x218   : > { %s1779_s16 = smov %s1350_s18  ;;  %26 = sbr.rel (!%p24_p10) target bundleno = 28 (0x1c), region = 133 }
 0x219   : > { %s1776_s1 = smov %s1770_s23 }
 0x21b   : > { %s1780_s18 = smov %s1773_s9 }
 0x21f   :  { %897 = vsyncpa [#allocation8], 1 }
 0x220   :  { %899 = vsyncpa [#allocation8 + $0x1], 1 }

</bundles_post_ra>
